<compile_context>
chip_gen: v5e
topology: v5e:2x2
jax: 0.10.0
libtpu: 0.0.40
codegen_flags: <defaults>
</compile_context>

<pallas_src>
import functools

import jax
import jax.numpy as jnp
from jax.experimental import pallas as pl
from jax.experimental.pallas import tpu as pltpu


def _round_up(a, m):
    return -(-a // m) * m


def _sublane(dtype):
    # Native second-minor tile multiple per dtype: 8 (f32) / 16 (bf16) / 32 (int8).
    return {4: 8, 2: 16, 1: 32}.get(jnp.dtype(dtype).itemsize, 8)


def _feature_attention_kernel(x_ref, w_ref, b_ref, o_ref, *, approx_sigmoid):
    # x_ref: (tm, Dp)   w_ref: (Dp, Dp) block-diagonal (in x out)   b_ref: (1, Dp)
    x = x_ref[...]
    xm = x if x.dtype == w_ref.dtype else x.astype(w_ref.dtype)
    logits = jnp.dot(xm, w_ref[...], preferred_element_type=jnp.float32) + b_ref[...]
    if approx_sigmoid:
        # sigmoid(z) = 1 / (1 + exp(-z)); one EUP exp + one approx EUP reciprocal
        # keeps the gate math off the VALU slot and hidden under DMA.
        weights = pl.reciprocal(1.0 + jnp.exp(-logits), approx=True)
    else:
        weights = jax.nn.sigmoid(logits)
    o_ref[...] = (x * weights).astype(o_ref.dtype)


def feature_attention(x, w, b, *, tm=4096, pack=True, approx_sigmoid=True,
                      matmul_dtype=None):
    """FeatureAttention forward: x * sigmoid(x @ w.T + b).

    x: (..., D).  w: (D, D) torch-style Linear weight (out_features, in_features).
    b: (D,).
    """
    orig_shape = x.shape
    D = orig_shape[-1]
    x2 = x.reshape(-1, D)
    N = x2.shape[0]

    # ---- lane-dense packing: P logical rows side by side along the 128-lane dim ----
    P = 128 // D if (pack and D < 128 and 128 % D == 0) else 1
    Dp = P * D

    if P > 1:
        n_rows = _round_up(N, P)          # tiny (< P rows) pad only if N % P != 0
        if n_rows != N:
            x2 = jnp.pad(x2, ((0, n_rows - N), (0, 0)))
        Np = n_rows // P
        xp = x2.reshape(Np, Dp)
    else:
        n_rows = N
        Np = N
        xp = x2

    # ---- row tiling: big ragged tiles, even step count so v7x's 2 TCs split evenly ----
    sub = _sublane(x.dtype)
    tm_eff = _round_up(max(1, min(tm, Np)), sub)
    steps = -(-Np // tm_eff)
    if steps > 1 and steps % 2 != 0:
        steps += 1
        tm_eff = _round_up(-(-Np // steps), sub)
        steps = -(-Np // tm_eff)
    grid = (steps,)

    # ---- block-diagonal weight / tiled bias (tiny one-time host-side transform) ----
    w_t = w.T                                              # (in, out) so kernel does x @ W.T
    if P > 1:
        w_big = jnp.kron(jnp.eye(P, dtype=w.dtype), w_t)   # (Dp, Dp) block-diagonal
        b_big = jnp.tile(b, P)
    else:
        w_big, b_big = w_t, b
    if matmul_dtype is not None:
        w_big = w_big.astype(matmul_dtype)                 # e.g. bf16 single-pass MXU
    b2 = b_big.astype(jnp.float32).reshape(1, Dp)

    # ---- VMEM budget: in/out blocks double-buffered + resident weight/bias + headroom ----
    itemsize = jnp.dtype(x.dtype).itemsize
    block_bytes = tm_eff * Dp * itemsize
    w_bytes = Dp * Dp * jnp.dtype(w_big.dtype).itemsize
    vmem_limit = int(min(48 << 20, max(16 << 20, 4 * block_bytes + 2 * w_bytes + (2 << 20))))

    kernel = functools.partial(_feature_attention_kernel, approx_sigmoid=approx_sigmoid)

    out = pl.pallas_call(
        kernel,
        out_shape=jax.ShapeDtypeStruct((Np, Dp), x.dtype),
        grid_spec=pltpu.PrefetchScalarGridSpec(
            num_scalar_prefetch=0,
            grid=grid,
            in_specs=[
                pl.BlockSpec((tm_eff, Dp), lambda i: (i, 0)),   # packed row tile
                pl.BlockSpec((Dp, Dp), lambda i: (0, 0)),       # resident block-diag weight
                pl.BlockSpec((1, Dp), lambda i: (0, 0)),        # resident bias
            ],
            out_specs=pl.BlockSpec((tm_eff, Dp), lambda i: (i, 0)),
        ),
        compiler_params=pltpu.CompilerParams(
            dimension_semantics=("parallel",),   # shards row tiles across v7x's 2 TCs
            vmem_limit_bytes=vmem_limit,
        ),
    )(xp, w_big, b2)

    # Unpack back to the original layout (no tail unpad needed: out is already (Np, Dp)).
    if P > 1:
        out = out.reshape(n_rows, D)[:N]
    return out.reshape(orig_shape)


def feature_attention_ref(x, w, b):
    logits = jnp.einsum("...i,oi->...o", x, w) + b
    return x * jax.nn.sigmoid(logits)


if __name__ == "__main__":
    batch, seq, input_dim = 2, 8, 32
    key = jax.random.PRNGKey(0)
    kx, kw, kb = jax.random.split(key, 3)

    x = jax.random.normal(kx, (batch, seq, input_dim), dtype=jnp.float32)
    # Deterministic synthetic Linear params, torch-style shape (out_features, in_features).
    bound = 1.0 / jnp.sqrt(input_dim)
    w = jax.random.uniform(kw, (input_dim, input_dim), minval=-bound, maxval=bound,
                           dtype=jnp.float32)
    b = jax.random.uniform(kb, (input_dim,), minval=-bound, maxval=bound,
                           dtype=jnp.float32)

    ref = feature_attention_ref(x, w, b)

    # Tolerance accommodates the approx-reciprocal sigmoid and the possibility of a
    # single-pass-bf16 MXU lowering of the f32 dot (per perf review correctness note);
    # the gate computation itself is faithful f32.
    TOL = 2e-2

    # Default fast path: packed 128-lane layout + approx-reciprocal sigmoid.
    out_fast = jax.block_until_ready(feature_attention(x, w, b))
    assert out_fast.shape == x.shape
    assert jnp.allclose(out_fast, ref, atol=TOL, rtol=TOL), "packed/approx path mismatch"

    # Exact-sigmoid path (approx disabled).
    out_exact = jax.block_until_ready(feature_attention(x, w, b, approx_sigmoid=False))
    assert jnp.allclose(out_exact, ref, atol=TOL, rtol=TOL), "exact-sigmoid path mismatch"

    # No-pack path ((tm, D) blocks, D == full last dim): skips the host-side
    # (N, D) <-> (Np, 128) relayout when this op runs standalone.
    out_nopack = jax.block_until_ready(
        feature_attention(x, w, b, pack=False, approx_sigmoid=False))
    assert jnp.allclose(out_nopack, ref, atol=TOL, rtol=TOL), "no-pack path mismatch"

    print("KERNEL_OK")
</pallas_src>

<mosaic_0001>
module attributes {stable_mosaic.version = 11 : i64} {
  func.func @_feature_attention_kernel(%arg0: i32, %arg1: memref<8x128xf32, #tpu.memory_space<vmem>>, %arg2: memref<128x128xf32, #tpu.memory_space<vmem>>, %arg3: memref<1x128xf32, #tpu.memory_space<vmem>>, %arg4: memref<8x128xf32, #tpu.memory_space<vmem>>) attributes {dimension_semantics = [#tpu.dimension_semantics<parallel>], iteration_bounds = array<i64: 1>, scalar_prefetch = 0 : i64, scratch_operands = 0 : i64, tpu.core_type = #tpu.core_type<tc>, window_params = [{transform_indices = @transform_0, window_bounds = array<i64: 8, 128>}, {pipeline_mode = #tpu.pipeline_mode<synchronous>, transform_indices = @transform_1, window_bounds = array<i64: 128, 128>}, {pipeline_mode = #tpu.pipeline_mode<synchronous>, transform_indices = @transform_2, window_bounds = array<i64: 1, 128>}, {transform_indices = @transform_3, window_bounds = array<i64: 8, 128>}]} {
    %c0 = arith.constant 0 : index
    %c0_0 = arith.constant 0 : index
    %0 = vector.load %arg1[%c0, %c0_0] : memref<8x128xf32, #tpu.memory_space<vmem>>, vector<8x128xf32>
    %c0_1 = arith.constant 0 : index
    %c0_2 = arith.constant 0 : index
    %1 = vector.load %arg2[%c0_1, %c0_2] : memref<128x128xf32, #tpu.memory_space<vmem>>, vector<128x128xf32>
    %cst = arith.constant dense<0.000000e+00> : vector<8x128xf32>
    %2 = tpu.matmul %0, %1, %cst {dimension_numbers = #tpu.dot_dimension_numbers<[1], [0], [0], [1], [0, 0, 1, 1], [], []>} : vector<8x128xf32>, vector<128x128xf32>, vector<8x128xf32> -> vector<8x128xf32>
    %c0_3 = arith.constant 0 : index
    %c0_4 = arith.constant 0 : index
    %3 = vector.load %arg3[%c0_3, %c0_4] : memref<1x128xf32, #tpu.memory_space<vmem>>, vector<1x128xf32>
    %4 = vector.broadcast %3 : vector<1x128xf32> to vector<8x128xf32>
    %5 = arith.addf %2, %4 : vector<8x128xf32>
    %cst_5 = arith.constant 0.000000e+00 : f32
    %6 = vector.broadcast %cst_5 : f32 to vector<8x128xf32>
    %7 = arith.subf %6, %5 : vector<8x128xf32>
    %8 = math.exp %7 : vector<8x128xf32>
    %cst_6 = arith.constant 1.000000e+00 : f32
    %9 = vector.broadcast %cst_6 : f32 to vector<8x128xf32>
    %10 = arith.addf %9, %8 : vector<8x128xf32>
    %11 = tpu.reciprocal %10 {approx = true} : vector<8x128xf32> -> vector<8x128xf32>
    %12 = arith.mulf %0, %11 : vector<8x128xf32>
    %c0_7 = arith.constant 0 : index
    %c0_8 = arith.constant 0 : index
    %13 = vector.load %arg4[%c0_7, %c0_8] : memref<8x128xf32, #tpu.memory_space<vmem>>, vector<8x128xf32>
    tpu.vector_store %arg4[%c0_7, %c0_8], %12 {strides = array<i32>} : memref<8x128xf32, #tpu.memory_space<vmem>>, vector<8x128xf32>,
    return
  }
  func.func @transform_0(%arg0: i32) -> (i32, i32) {
    %c0_i32 = arith.constant 0 : i32
    %c0_i32_0 = arith.constant 0 : i32
    return %arg0, %c0_i32 : i32, i32
  }
  func.func @transform_1(%arg0: i32) -> (i32, i32) {
    %c0_i32 = arith.constant 0 : i32
    %c0_i32_0 = arith.constant 0 : i32
    %c0_i32_1 = arith.constant 0 : i32
    return %c0_i32, %c0_i32_0 : i32, i32
  }
  func.func @transform_2(%arg0: i32) -> (i32, i32) {
    %c0_i32 = arith.constant 0 : i32
    %c0_i32_0 = arith.constant 0 : i32
    %c0_i32_1 = arith.constant 0 : i32
    return %c0_i32, %c0_i32_0 : i32, i32
  }
  func.func @transform_3(%arg0: i32) -> (i32, i32) {
    %c0_i32 = arith.constant 0 : i32
    %c0_i32_0 = arith.constant 0 : i32
    return %arg0, %c0_i32 : i32, i32
  }
}

</mosaic_0001>

<bundles_post_ra>
// kernel: tpu_custom_call.1
= control target key start
LH: loop header
LB: loop body
LE: loop exit
PB: predicated region body
PF: predicated region fallthrough
CT: control target
= control target key end

     0   :  { %8 = vsyncpa [#allocation3], 0  ;;  %s250_s0 = inlined_call_operand.hbm [shape: f32[4,128], index: 0, kind: input, shape index: {}]   ;;  %s251_s1 = inlined_call_operand.hbm [shape: f32[128,128], index: 1, kind: input, shape index: {}]   ;;  %s252_s2 = inlined_call_operand.vmem [shape: f32[1,128], index: 2, kind: input, shape index: {}]   ;;  %s253_s3 = inlined_call_operand.hbm [shape: f32[4,128], index: 3, kind: output, shape index: {}]  }
   0x1   :  { %9 = vsyncpa [#allocation6], 0 }
   0x2   :  { %10 = vsyncpa [#allocation4], 0 }
   0x3   :  { %14 = vsyncadd [#allocation3], 64  ;;  %s15_s14 = sshll.u32 %s250_s0, 4  ;;  %s205_s15 = smov [#allocation2]   ;;  %s16_s14 = int_to_ptr.hbm [resolvable:$true] %s15_s14 }
   0x4   :  { %s17_s16 = sshll.u32 %s205_s15, 4  ;;  %s28_s19 = sshll.u32 %s251_s1, 4  ;;  %s18_s16 = int_to_ptr.vmem [resolvable:$true] %s17_s16  ;;  %s29_s19 = int_to_ptr.hbm [resolvable:$true] %s28_s19 }
   0x5   :  { %s206_s20 = smov 64   ;;  %s207_s21 = smov 4  }
   0x6   :  { %23 = dma.hbm_to_vmem [thread:$0]  %s16_s14, 64, %s18_s16, [#allocation3], %s206_s20, %s206_s20, %s207_s21  }
   0x7   :  { %s208_s22 = smov [#allocation5]   ;;  %s209_s24 = smov 128  }
   0x8   :  { %s30_s23 = sshll.u32 %s208_s22, 4  ;;  %s210_s0 = smov 8   ;;  %s31_s23 = int_to_ptr.vmem [resolvable:$true] %s30_s23 }
   0x9   :  { %36 = dma.hbm_to_vmem [thread:$0]  %s29_s19, 2048, %s31_s23, [#allocation6], %s209_s24, %s209_s24, %s210_s0  }
   0xa   :  { %199 = dma.done.wait [#allocation3], 128  }
   0xb   :  { %200 = vsyncadd [#allocation3], 4294967168 }
   0xc   :  { %201 = dma.done.wait [#allocation6], 2048  }
   0xd   :  { %202 = vsyncadd [#allocation6], 4294965248  ;;  %v63_v0 = vld [vmem:[#allocation5 + $0x78] sm:$0xff]  ;;  %v62_v1 = vld [vmem:[#allocation5 + $0x70] sm:$0xff] }
   0xe   :  { %68 = vmatpush.msra.mxu0 %v63_v0  ;;  %v61_v2 = vld [vmem:[#allocation5 + $0x68] sm:$0xff]  ;;  %v60_v3 = vld [vmem:[#allocation5 + $0x60] sm:$0xff]  ;;  %v59_v4 = vld [vmem:[#allocation5 + $0x58] sm:$0xff] }
   0xf   :  { %v58_v5 = vld [vmem:[#allocation5 + $0x50] sm:$0xff]  ;;  %v57_v6 = vld [vmem:[#allocation5 + $0x48] sm:$0xff]  ;;  %v56_v7 = vld [vmem:[#allocation5 + $0x40] sm:$0xff] }
  0x10   :  { %69 = vmatpush.msra.mxu0 %v62_v1  ;;  %v55_v8 = vld [vmem:[#allocation5 + $0x38] sm:$0xff]  ;;  %v54_v9 = vld [vmem:[#allocation5 + $0x30] sm:$0xff]  ;;  %v53_v10 = vld [vmem:[#allocation5 + $0x28] sm:$0xff] }
  0x11   :  { %v52_v11 = vld [vmem:[#allocation5 + $0x20] sm:$0xff]  ;;  %v51_v12 = vld [vmem:[#allocation5 + $0x18] sm:$0xff]  ;;  %v50_v13 = vld [vmem:[#allocation5 + $0x10] sm:$0xff] }
  0x12   :  { %70 = vmatpush.msra.mxu0 %v61_v2  ;;  %v49_v14 = vld [vmem:[#allocation5 + $0x8] sm:$0xff]  ;;  %v48_v15 = vld [vmem:[#allocation5] sm:$0xff]  ;;  %v47_v16 = vld [vmem:[#allocation2] sm:$0xff] }
  0x13   :  { %v122_v17 = vld [vmem:[%s252_s2] ss:$0 sm:$0xff] }
  0x14   :  { %71 = vmatpush.msra.mxu0 %v60_v3 }
  0x16   :  { %72 = vmatpush.msra.mxu0 %v59_v4 }
  0x18   :  { %73 = vmatpush.msra.mxu0 %v58_v5 }
  0x1a   :  { %74 = vmatpush.msra.mxu0 %v57_v6 }
  0x1c   :  { %75 = vmatpush.msra.mxu0 %v56_v7 }
  0x1e   :  { %76 = vmatpush.msra.mxu0 %v55_v8 }
  0x20   :  { %77 = vmatpush.msra.mxu0 %v54_v9 }
  0x22   :  { %78 = vmatpush.msra.mxu0 %v53_v10 }
  0x24   :  { %79 = vmatpush.msra.mxu0 %v52_v11 }
  0x26   :  { %80 = vmatpush.msra.mxu0 %v51_v12 }
  0x28   :  { %81 = vmatpush.msra.mxu0 %v50_v13 }
  0x2a   :  { %82 = vmatpush.msra.mxu0 %v49_v14 }
  0x2c   :  { %83 = vmatpush.msra.mxu0 %v48_v15 }
  0x2d   :  { %84 = vmatmul.f32.vlgmr.msra.gmra.mxu0 %v47_v16 }
  0xaa   :  { %v85_v18 = vpop.f32.mrf.mxu0 }
  0xab   :  { %v86_v19 = vadd.f32 %v122_v17, %v85_v18 }
  0xad   :  { %v88_v20 = vsub.f32 0.0, %v86_v19 }
  0xaf   :  { %v89_v21 = vmul.f32 1.442695, %v88_v20 }
  0xb1   :  { %123 = vpow2.f32 %v89_v21 }
  0xb7   :  { %v124_v22 = vpop.eup %123 }
  0xb8   :  { %v91_v23 = vadd.f32 1.0, %v124_v22 }
  0xba   :  { %125 = vrcp.f32 %v91_v23 }
  0xc0   :  { %v126_v24 = vpop.eup %125 }
  0xc1   :  { %v93_v25 = vmul.f32 %v126_v24, %v47_v16 }
  0xc3   :  { %94 = vst [vmem:[#allocation7] sm:$0xff] %v93_v25 }
  0xc4   :  { %98 = vsyncadd [#allocation4], 64  ;;  %s101_s28 = sshll.u32 %s253_s3, 4  ;;  %s211_s29 = smov [#allocation7]   ;;  %s102_s28 = int_to_ptr.hbm [resolvable:$true] %s101_s28 }
  0xc5   :  { %s99_s30 = sshll.u32 %s211_s29, 4  ;;  %s100_s30 = int_to_ptr.vmem [resolvable:$true] %s99_s30 }
  0xc6   :  { %107 = dma.vmem_to_hbm [thread:$0]  %s100_s30, 64, %s102_s28, [#allocation4], %s206_s20, %s206_s20, %s207_s21  }
  0xc7   :  { %203 = dma.done.wait [#allocation4], 128  }
  0xc8   :  { %204 = vsyncadd [#allocation4], 4294967168 }
  0xc9   :  { %112 = vsyncpa [#allocation3], 1 }
  0xca   :  { %113 = vsyncpa [#allocation6], 1 }
  0xcb   :  { %114 = vsyncpa [#allocation4], 1 }

</bundles_post_ra>
